<compile_context>
chip_gen: v6e
topology: v6e:2x2x1
jax: 0.10.0
libtpu: 0.0.40
codegen_flags: <defaults>
</compile_context>

<pallas_src>
import functools

import numpy as np
import jax
import jax.numpy as jnp
from jax import lax
from jax.experimental import pallas as pl
from jax.experimental.pallas import tpu as pltpu


# ----------------------------------------------------------------------------
# Tiled linear kernel:  y = x @ w + b   (bf16 x / w, f32 accumulate & output)
#   x: (N, Din) bf16, w: (Din, Dout) bf16, b: (1, Dout) f32 -> y: (N, Dout) f32
# ----------------------------------------------------------------------------
def _linear_kernel(x_ref, w_ref, b_ref, o_ref, acc_ref):
    k = pl.program_id(2)

    @pl.when(k == 0)
    def _():
        acc_ref[...] = jnp.broadcast_to(b_ref[...].astype(jnp.float32),
                                        acc_ref.shape)

    acc_ref[...] += jnp.dot(x_ref[...], w_ref[...],
                            preferred_element_type=jnp.float32)

    @pl.when(k == pl.num_programs(2) - 1)
    def _():
        o_ref[...] = acc_ref[...].astype(o_ref.dtype)


def _pick_tile(dim, target, step):
    """Largest multiple of `step` <= target that divides `dim`; else full dim."""
    t = min(target, dim)
    t -= t % step
    while t >= step:
        if dim % t == 0:
            return t
        t -= step
    return dim


def pallas_linear(x, w, b, *, tm=512, tn=512, tk=512):
    N, Din = x.shape
    Dout = w.shape[1]
    tm = _pick_tile(N, tm, 8)       # sublane axis: multiple of 8 (or full)
    tn = _pick_tile(Dout, tn, 128)  # lane axis: multiple of 128 (or full)
    tk = _pick_tile(Din, tk, 128)   # lane of x / sublane of w
    grid = (N // tm, Dout // tn, Din // tk)
    return pl.pallas_call(
        _linear_kernel,
        out_shape=jax.ShapeDtypeStruct((N, Dout), jnp.float32),
        grid=grid,
        in_specs=[pl.BlockSpec((tm, tk), lambda i, j, k: (i, k)),
                  pl.BlockSpec((tk, tn), lambda i, j, k: (k, j)),
                  pl.BlockSpec((1, tn), lambda i, j, k: (0, j))],
        out_specs=pl.BlockSpec((tm, tn), lambda i, j, k: (i, j)),
        scratch_shapes=[pltpu.VMEM((tm, tn), jnp.float32)],
        compiler_params=pltpu.CompilerParams(
            dimension_semantics=("parallel", "parallel", "arbitrary"),
            vmem_limit_bytes=48 * 1024 * 1024),   # <= v7x 64 MiB budget
    )(x, w, b)


# ----------------------------------------------------------------------------
# Bidirectional LSTM recurrence kernel (both directions fused).
#
#   gates:  (T, B, 8H) f32 pre-activations x @ W_cat + b_cat, with the 8H lane
#           axis laid out as direction-interleaved gate groups
#           [i_f, i_b, f_f, f_b, o_f, o_b, g_f, g_b]   (each group H wide).
#   w_rec:  (2H, 8H) bf16 block-diagonal recurrent weights (rows [0:H] = fwd h,
#           rows [H:2H] = bwd h), same interleaved column layout.
#   out:    (T, B, 2H) f32, lanes [0:H] = forward h_t, lanes [H:2H] = backward
#           h_t (PyTorch bidirectional output layout).
#
# Grid runs over batch blocks only ("parallel"); the whole time axis is
# resident in VMEM and walked by an inner fori_loop: forward time s and
# backward original time T-1-s advance together each inner step.
# ----------------------------------------------------------------------------
def _bilstm_rec_kernel(gates_ref, wrec_ref, out_ref, hc_ref, cc_ref,
                       *, seq_len, hidden):
    T, H = seq_len, hidden
    Bb = hc_ref.shape[0]

    # fresh state per batch block (grid axis is parallel -> no pl.when gate)
    hc_ref[...] = jnp.zeros_like(hc_ref)
    cc_ref[...] = jnp.zeros_like(cc_ref)

    wrec = wrec_ref[...]                                   # bf16, stays in vregs
    lane = lax.broadcasted_iota(jnp.int32, (Bb, 8 * H), 1)
    fwd_lane = ((lane // H) % 2) == 0                      # even H-groups = fwd

    def body(s, carry):
        row_f = gates_ref[s]              # (Bb, 8H): fwd groups valid (time s)
        row_b = gates_ref[T - 1 - s]      # (Bb, 8H): bwd groups valid (time T-1-s)
        pre = jnp.where(fwd_lane, row_f, row_b)

        rec = jnp.dot(hc_ref[...].astype(jnp.bfloat16), wrec,
                      preferred_element_type=jnp.float32)  # (Bb, 8H)
        z = pre + rec

        sig = jax.nn.sigmoid(z[:, :6 * H])                 # contiguous i|f|o slab
        g_c = jnp.tanh(z[:, 6 * H:])                       # contiguous g slab
        i_c = sig[:, 0:2 * H]
        f_c = sig[:, 2 * H:4 * H]
        o_c = sig[:, 4 * H:6 * H]

        c_new = f_c * cc_ref[...] + i_c * g_c              # (Bb, 2H) [fwd|bwd]
        h_new = o_c * jnp.tanh(c_new)
        cc_ref[...] = c_new
        hc_ref[...] = h_new

        out_ref[pl.ds(s, 1), :, 0:H] = h_new[None, :, 0:H]
        out_ref[pl.ds(T - 1 - s, 1), :, H:2 * H] = h_new[None, :, H:2 * H]
        return carry

    lax.fori_loop(0, T, body, 0, unroll=True if T <= 64 else 8)


def pallas_bilstm_recurrence(gates, w_rec, *, hidden):
    T, B, G8 = gates.shape
    H = hidden
    assert G8 == 8 * H

    # batch block: keep (gates + out) for the full time axis under ~8 MiB
    per_row = T * (8 * H + 2 * H) * 4
    bb_target = max(8, (8 << 20) // max(per_row, 1))
    Bb = _pick_tile(B, bb_target, 8)

    kernel = functools.partial(_bilstm_rec_kernel, seq_len=T, hidden=H)
    return pl.pallas_call(
        kernel,
        out_shape=jax.ShapeDtypeStruct((T, B, 2 * H), jnp.float32),
        grid=(B // Bb,),
        in_specs=[
            pl.BlockSpec((T, Bb, G8), lambda b: (0, b, 0)),   # full-T gate slab
            pl.BlockSpec((2 * H, G8), lambda b: (0, 0)),      # resident W_rec (bf16)
        ],
        out_specs=pl.BlockSpec((T, Bb, 2 * H), lambda b: (0, b, 0)),
        scratch_shapes=[pltpu.VMEM((Bb, 2 * H), jnp.float32),   # h_cat
                        pltpu.VMEM((Bb, 2 * H), jnp.float32)],  # c_cat
        compiler_params=pltpu.CompilerParams(
            dimension_semantics=("parallel",),                  # batch blocks independent
            vmem_limit_bytes=48 * 1024 * 1024),
    )(gates, w_rec)


# ----------------------------------------------------------------------------
# Parameter packing helpers
# ----------------------------------------------------------------------------
def _reorder_ifog(w, H):
    """Reorder last-axis gate blocks from PyTorch [i,f,g,o] to [i,f,o,g]."""
    return jnp.concatenate([w[..., 0:H], w[..., H:2 * H],
                            w[..., 3 * H:4 * H], w[..., 2 * H:3 * H]], axis=-1)


def _interleave_dirs(wf, wb, H):
    """(R,4H) fwd + (R,4H) bwd -> (R,8H) [i_f,i_b,f_f,f_b,o_f,o_b,g_f,g_b]."""
    R = wf.shape[0]
    stacked = jnp.stack([wf.reshape(R, 4, H), wb.reshape(R, 4, H)], axis=2)
    return stacked.reshape(R, 8 * H)


# ----------------------------------------------------------------------------
# Module wrapper
# ----------------------------------------------------------------------------
class LSTMLayersPallas:
    """forward(hidden_states) of nn.LSTM(E, E//2, 2, bidirectional=True,
    batch_first=True) with zero initial (h0, c0)."""

    def __init__(self, embed_dim, num_layers=2, key=None):
        assert embed_dim % 2 == 0
        self.embed_dim = embed_dim
        self.hidden = embed_dim // 2
        self.num_layers = num_layers
        H = self.hidden
        bound = 1.0 / float(np.sqrt(H))
        keys = jax.random.split(key, num_layers * 8)
        ki = 0
        self.layers = []
        for _ in range(num_layers):
            in_dim = embed_dim  # layer>0 input is 2H == embed_dim

            def u(shape):
                nonlocal ki
                k = keys[ki]
                ki += 1
                return jax.random.uniform(k, shape, jnp.float32, -bound, bound)

            self.layers.append(dict(
                W_ih_f=u((4 * H, in_dim)), W_hh_f=u((4 * H, H)),
                b_ih_f=u((4 * H,)), b_hh_f=u((4 * H,)),
                W_ih_b=u((4 * H, in_dim)), W_hh_b=u((4 * H, H)),
                b_ih_b=u((4 * H,)), b_hh_b=u((4 * H,)),
            ))

        # kernel-friendly packed params: [i,f,o,g] gate order, direction-
        # interleaved columns, biases folded, block-diag recurrent weights,
        # bf16 for everything feeding the MXU.
        self.packed = []
        for L in self.layers:
            Wif = _reorder_ifog(L["W_ih_f"].T, H)           # (Din, 4H)
            Wib = _reorder_ifog(L["W_ih_b"].T, H)
            W_cat = _interleave_dirs(Wif, Wib, H).astype(jnp.bfloat16)   # (Din, 8H)

            bf = _reorder_ifog((L["b_ih_f"] + L["b_hh_f"]).reshape(1, -1), H)
            bb = _reorder_ifog((L["b_ih_b"] + L["b_hh_b"]).reshape(1, -1), H)
            b_cat = _interleave_dirs(bf, bb, H)                          # (1, 8H) f32

            Whf = _reorder_ifog(L["W_hh_f"].T, H)           # (H, 4H)
            Whb = _reorder_ifog(L["W_hh_b"].T, H)
            fwd_rows = jnp.concatenate([Whf, jnp.zeros_like(Whf)], axis=0)  # (2H,4H)
            bwd_rows = jnp.concatenate([jnp.zeros_like(Whb), Whb], axis=0)  # (2H,4H)
            W_rec = _interleave_dirs(fwd_rows, bwd_rows, H).astype(jnp.bfloat16)  # (2H,8H)

            self.packed.append((W_cat, b_cat, W_rec))

    def __call__(self, hidden_states):
        B, T, E = hidden_states.shape
        H = self.hidden
        act = jnp.transpose(hidden_states, (1, 0, 2))        # time-major (T, B, E)
        for (W_cat, b_cat, W_rec) in self.packed:
            Din = act.shape[-1]
            gates = pallas_linear(
                act.reshape(T * B, Din).astype(jnp.bfloat16), W_cat, b_cat)
            gates = gates.reshape(T, B, 8 * H)                # (T, B, 8H) f32
            act = pallas_bilstm_recurrence(gates, W_rec, hidden=H)  # (T, B, 2H) f32
        return jnp.transpose(act, (1, 0, 2))                  # (B, T, E)

    # pure-JAX reference mirroring PyTorch nn.LSTM forward (zero initial state)
    def reference(self, hidden_states):
        xt = jnp.transpose(hidden_states, (1, 0, 2))

        def run_dir(xs, W_ih, W_hh, b_ih, b_hh, reverse):
            H = W_hh.shape[1]
            Bsz = xs.shape[1]

            def cell(carry, x_t):
                h, c = carry
                gates = (jnp.dot(x_t, W_ih.T, precision=lax.Precision.HIGHEST) + b_ih
                         + jnp.dot(h, W_hh.T, precision=lax.Precision.HIGHEST) + b_hh)
                i, f, g, o = jnp.split(gates, 4, axis=-1)
                c = jax.nn.sigmoid(f) * c + jax.nn.sigmoid(i) * jnp.tanh(g)
                h = jax.nn.sigmoid(o) * jnp.tanh(c)
                return (h, c), h

            init = (jnp.zeros((Bsz, H), jnp.float32),
                    jnp.zeros((Bsz, H), jnp.float32))
            _, hs = lax.scan(cell, init, xs, reverse=reverse)
            return hs  # (T, B, H) aligned with input time order

        for L in self.layers:
            hf = run_dir(xt, L["W_ih_f"], L["W_hh_f"], L["b_ih_f"], L["b_hh_f"], False)
            hb = run_dir(xt, L["W_ih_b"], L["W_hh_b"], L["b_ih_b"], L["b_hh_b"], True)
            xt = jnp.concatenate([hf, hb], axis=-1)
        return jnp.transpose(xt, (1, 0, 2))


if __name__ == "__main__":
    # embed_dim=64 -> hidden=32 per direction; fused gate width 8H = 256 lanes.
    B, T, E = 2, 8, 64
    root = jax.random.PRNGKey(0)
    k_x, k_params = jax.random.split(root)

    model = LSTMLayersPallas(embed_dim=E, num_layers=2, key=k_params)
    x = jax.random.normal(k_x, (B, T, E), jnp.float32)

    out = jax.block_until_ready(model(x))
    assert out.shape == (B, T, E)

    ref = model.reference(x)
    # bf16 MXU inputs vs. the f32 HIGHEST-precision reference: tolerance relaxed
    # accordingly (the all-f32 variant of this kernel matches at 2e-3).
    np.testing.assert_allclose(np.asarray(out), np.asarray(ref),
                               rtol=2e-2, atol=2e-2)

    print("KERNEL_OK")
</pallas_src>

<mosaic_0001>
module attributes {stable_mosaic.version = 11 : i64} {
  func.func @_linear_kernel(%arg0: i32, %arg1: i32, %arg2: i32, %arg3: memref<16x64xbf16, #tpu.memory_space<vmem>>, %arg4: memref<64x256xbf16, #tpu.memory_space<vmem>>, %arg5: memref<1x256xf32, #tpu.memory_space<vmem>>, %arg6: memref<16x256xf32, #tpu.memory_space<vmem>>, %arg7: memref<16x256xf32, #tpu.memory_space<vmem>>) attributes {dimension_semantics = [#tpu.dimension_semantics<parallel>, #tpu.dimension_semantics<parallel>, #tpu.dimension_semantics<arbitrary>], iteration_bounds = array<i64: 1, 1, 1>, scalar_prefetch = 0 : i64, scratch_operands = 1 : i64, tpu.core_type = #tpu.core_type<tc>, window_params = [{transform_indices = @transform_0, window_bounds = array<i64: 16, 64>}, {transform_indices = @transform_1, window_bounds = array<i64: 64, 256>}, {transform_indices = @transform_2, window_bounds = array<i64: 1, 256>}, {transform_indices = @transform_3, window_bounds = array<i64: 16, 256>}]} {
    %c0_i32 = arith.constant 0 : i32
    %0 = arith.cmpi eq, %arg2, %c0_i32 : i32
    %1 = arith.extui %0 : i1 to i32
    %c0_i32_0 = arith.constant 0 : i32
    %2 = arith.cmpi ne, %1, %c0_i32_0 : i32
    scf.if %2 {
      %c0_10 = arith.constant 0 : index
      %c0_11 = arith.constant 0 : index
      %12 = vector.load %arg5[%c0_10, %c0_11] : memref<1x256xf32, #tpu.memory_space<vmem>>, vector<1x256xf32>
      %13 = vector.shape_cast %12 : vector<1x256xf32> to vector<1x256xf32>
      %14 = vector.broadcast %13 : vector<1x256xf32> to vector<16x256xf32>
      %c0_12 = arith.constant 0 : index
      %c0_13 = arith.constant 0 : index
      %15 = vector.load %arg7[%c0_12, %c0_13] : memref<16x256xf32, #tpu.memory_space<vmem>>, vector<16x256xf32>
      tpu.vector_store %arg7[%c0_12, %c0_13], %14 {strides = array<i32>} : memref<16x256xf32, #tpu.memory_space<vmem>>, vector<16x256xf32>,
    } else {
    }
    %c0 = arith.constant 0 : index
    %c0_1 = arith.constant 0 : index
    %3 = vector.load %arg7[%c0, %c0_1] : memref<16x256xf32, #tpu.memory_space<vmem>>, vector<16x256xf32>
    %c0_2 = arith.constant 0 : index
    %c0_3 = arith.constant 0 : index
    %4 = vector.load %arg3[%c0_2, %c0_3] : memref<16x64xbf16, #tpu.memory_space<vmem>>, vector<16x64xbf16>
    %c0_4 = arith.constant 0 : index
    %c0_5 = arith.constant 0 : index
    %5 = vector.load %arg4[%c0_4, %c0_5] : memref<64x256xbf16, #tpu.memory_space<vmem>>, vector<64x256xbf16>
    %cst = arith.constant dense<0.000000e+00> : vector<16x256xf32>
    %6 = tpu.matmul %4, %5, %cst {dimension_numbers = #tpu.dot_dimension_numbers<[1], [0], [0], [1], [0, 0, 1, 1], [], []>} : vector<16x64xbf16>, vector<64x256xbf16>, vector<16x256xf32> -> vector<16x256xf32>
    %7 = arith.addf %3, %6 : vector<16x256xf32>
    %c0_6 = arith.constant 0 : index
    %c0_7 = arith.constant 0 : index
    %8 = vector.load %arg7[%c0_6, %c0_7] : memref<16x256xf32, #tpu.memory_space<vmem>>, vector<16x256xf32>
    tpu.vector_store %arg7[%c0_6, %c0_7], %7 {strides = array<i32>} : memref<16x256xf32, #tpu.memory_space<vmem>>, vector<16x256xf32>,
    %c0_i32_8 = arith.constant 0 : i32
    %9 = arith.cmpi eq, %arg2, %c0_i32_8 : i32
    %10 = arith.extui %9 : i1 to i32
    %c0_i32_9 = arith.constant 0 : i32
    %11 = arith.cmpi ne, %10, %c0_i32_9 : i32
    scf.if %11 {
      %c0_10 = arith.constant 0 : index
      %c0_11 = arith.constant 0 : index
      %12 = vector.load %arg7[%c0_10, %c0_11] : memref<16x256xf32, #tpu.memory_space<vmem>>, vector<16x256xf32>
      %c0_12 = arith.constant 0 : index
      %c0_13 = arith.constant 0 : index
      %13 = vector.load %arg6[%c0_12, %c0_13] : memref<16x256xf32, #tpu.memory_space<vmem>>, vector<16x256xf32>
      tpu.vector_store %arg6[%c0_12, %c0_13], %12 {strides = array<i32>} : memref<16x256xf32, #tpu.memory_space<vmem>>, vector<16x256xf32>,
    } else {
    }
    return
  }
  func.func @transform_0(%arg0: i32, %arg1: i32, %arg2: i32) -> (i32, i32) {
    %c0_i32 = arith.constant 0 : i32
    return %arg0, %arg2 : i32, i32
  }
  func.func @transform_1(%arg0: i32, %arg1: i32, %arg2: i32) -> (i32, i32) {
    %c0_i32 = arith.constant 0 : i32
    return %arg2, %arg1 : i32, i32
  }
  func.func @transform_2(%arg0: i32, %arg1: i32, %arg2: i32) -> (i32, i32) {
    %c0_i32 = arith.constant 0 : i32
    %c0_i32_0 = arith.constant 0 : i32
    return %c0_i32, %arg1 : i32, i32
  }
  func.func @transform_3(%arg0: i32, %arg1: i32, %arg2: i32) -> (i32, i32) {
    %c0_i32 = arith.constant 0 : i32
    return %arg0, %arg1 : i32, i32
  }
}

</mosaic_0001>

<bundles_post_ra>
// kernel: tpu_custom_call.1
= control target key start
LH: loop header
LB: loop body
LE: loop exit
PB: predicated region body
PF: predicated region fallthrough
CT: control target
= control target key end

     0   :  { %8 = vsyncpa [#allocation4], 0  ;;  %s348_s0 = inlined_call_operand.hbm [shape: bf16[16,64], index: 0, kind: input, shape index: {}]   ;;  %s349_s1 = inlined_call_operand.hbm [shape: bf16[64,256], index: 1, kind: input, shape index: {}]   ;;  %s350_s2 = inlined_call_operand.vmem [shape: f32[1,256], index: 2, kind: input, shape index: {}]   ;;  %s351_s3 = inlined_call_operand.hbm [shape: f32[16,256], index: 3, kind: output, shape index: {}]  }
   0x1   :  { %9 = vsyncpa [#allocation7], 0 }
   0x2   :  { %10 = vsyncpa [#allocation5], 0  ;;  %s306_s12 = smov [#allocation3]  }
   0x3   :  { %s16_s13 = sshll.u32 %s306_s12, 4  ;;  %s17_s13 = int_to_ptr.vmem [resolvable:$true] %s16_s13 }
   0x4   :  { %s248_s14 = scalar_lea.vmem %s17_s13, 128  ;;  %p253_p1 = scmp.lt.s32.totalorder %s17_s13, %s17_s13 }
   0x5   :  { %p249_p0 = scmp.ne.s32.totalorder %s17_s13, %s248_s14  ;;  %p254_p2 = scmp.lt.s32.totalorder %s248_s14, %s248_s14 }
   0x7   :  { %p255_p3 = por %p254_p2, %p253_p1 }
   0x9   :  { %p256_p4 = pnand %p255_p3, %p249_p0 }
   0xb   :  { %259 = shalt.err (!%p256_p4)
}
   0xc   :  { %s307_s15 = smov 64   ;;  %s308_s16 = smov 4  }
   0xd   :  { %22 = dma.hbm_to_vmem [thread:$0]  %s348_s0, 128, %s17_s13, [#allocation4], %s307_s15, %s307_s15, %s308_s16  }
   0xe   :  { %s309_s19 = smov [#allocation6]  }
   0xf   :  { %s28_s20 = sshll.u32 %s309_s19, 4  ;;  %s29_s20 = int_to_ptr.vmem [resolvable:$true] %s28_s20 }
  0x10   :  { %s268_s21 = scalar_lea.vmem %s29_s20, 1024  ;;  %p273_p6 = scmp.lt.s32.totalorder %s29_s20, %s29_s20 }
  0x11   :  { %p269_p5 = scmp.ne.s32.totalorder %s29_s20, %s268_s21  ;;  %p274_p7 = scmp.lt.s32.totalorder %s268_s21, %s268_s21 }
  0x13   :  { %p275_p8 = por %p274_p7, %p273_p6 }
  0x15   :  { %p276_p9 = pnand %p275_p8, %p269_p5 }
  0x17   :  { %279 = shalt.err (!%p276_p9)
}
  0x18   :  { %s310_s22 = smov 128   ;;  %s311_s23 = smov 8  }
  0x19   :  { %34 = dma.hbm_to_vmem [thread:$0]  %s349_s1, 1024, %s29_s20, [#allocation7], %s310_s22, %s310_s22, %s311_s23  }
  0x1a   :  { %300 = dma.done.wait [#allocation4], 128  }
  0x1b   :  { %301 = vsyncadd [#allocation4], 4294967168 }
  0x1c   :  { %302 = dma.done.wait [#allocation7], 1024  }
  0x1d   :  { %303 = vsyncadd [#allocation7], 4294966272  ;;  %v312_v0 = vmov 0   ;;  %v227_v1 = vld [vmem:[#allocation6 + $0x34] ss:$8 sps:$4 sm:$0xff]   ;;  %vm123_vm0 = vcmask 523264   ;;  %v50_v10 = vlaneseq }
  0x1e   :  { %159 = vmatprep.mubr.bf16.mxu0 %v312_v0  ;;  %v229_v2 = vld [vmem:[#allocation6 + $0x30] ss:$8 sps:$4 sm:$0xff]   ;;  %135 = vmatprep.subr.bf16.mxu0 %v227_v1  ;;  %v230_v3 = vld [vmem:[#allocation6 + $0x24] ss:$8 sps:$4 sm:$0xff]   ;;  %v232_v4 = vld [vmem:[#allocation6 + $0x20] ss:$8 sps:$4 sm:$0xff]  }
  0x1f   :  { %136 = vmatpush1.bf16.msra.mxu0 %v229_v2  ;;  %v233_v5 = vld [vmem:[#allocation6 + $0x14] ss:$8 sps:$4 sm:$0xff]   ;;  %v235_v6 = vld [vmem:[#allocation6 + $0x10] ss:$8 sps:$4 sm:$0xff]   ;;  %v236_v7 = vld [vmem:[#allocation6 + $0x4] ss:$8 sps:$4 sm:$0xff]  }
  0x20   :  { %137 = vmatprep.subr.bf16.mxu0 %v230_v3  ;;  %v238_v8 = vld [vmem:[#allocation6] ss:$8 sps:$4 sm:$0xff]   ;;  %v239_v9 = vld [vmem:[#allocation3] sm:$0xff]   ;;  %v51_v11 = vshrl.u32 %v50_v10, 7  ;;  %s313_s26 = smov [#allocation8]  }
  0x21   :  { %v48_v13 = vld [vmem:[%s350_s2] sm:$0x3]  ;;  %s194_s27 = sshll.u32 %s313_s26, 4  ;;  %s195_s27 = int_to_ptr.vmem [resolvable:$true] %s194_s27 }
  0x22   :  { %v52_v12 = vsub.s32 0, %v51_v11  ;;  %v56_v14 = vsub.s32 1, %v51_v11  ;;  %s280_s28 = scalar_lea.vmem %s195_s27, 512  ;;  %p285_p11 = scmp.lt.s32.totalorder %s195_s27, %s195_s27 }
  0x23   :  { %138 = vmatpush1.bf16.msra.mxu0 %v232_v4  ;;  %p281_p10 = scmp.ne.s32.totalorder %s195_s27, %s280_s28  ;;  %p286_p12 = scmp.lt.s32.totalorder %s280_s28, %s280_s28 }
  0x24   :  { %139 = vmatprep.subr.bf16.mxu0 %v233_v5  ;;  %v53_v15 = vrot.slane %v48_v13, %v52_v12  ;;  %v57_v16 = vrot.slane %v48_v13, %v56_v14 }
  0x25   :  { %p287_p13 = por %p286_p12, %p285_p11 }
  0x27   :  { %140 = vmatpush1.bf16.msra.mxu0 %v235_v6  ;;  %p288_p0 = pnand %p287_p13, %p281_p10 }
  0x28   :  { %141 = vmatprep.subr.bf16.mxu0 %v236_v7 }
  0x2b   :  { %142 = vmatpush1.bf16.msra.mxu0 %v238_v8 }
  0x2e   :  { %216 = vmatmul.mubr.msk.bf16.vlgmr.msra.gmra.mxu0 %vm123_vm0, %v239_v9 }
  0xee   :  { %v161_v17 = vpop.f32.mrf.mxu0 }
  0xef   :  { %v170_v18 = vadd.f32 %v161_v17, %v53_v15 }
  0xf0   :  { %v163_v19 = vpop.f32.mrf.mxu0 }
  0xf1   :  { %185 = vst [vmem:[#allocation8] sm:$0xff] %v170_v18  ;;  %v171_v20 = vadd.f32 %v163_v19, %v57_v16 }
  0xf2   :  { %v165_v21 = vpop.f32.mrf.mxu0 }
  0xf3   :  { %186 = vst [vmem:[#allocation8 + $0x8] sm:$0xff] %v171_v20  ;;  %v172_v22 = vadd.f32 %v165_v21, %v53_v15 }
  0xf4   :  { %v167_v23 = vpop.f32.mrf.mxu0 }
  0xf5   :  { %187 = vst [vmem:[#allocation8 + $0x10] sm:$0xff] %v172_v22  ;;  %v173_v24 = vadd.f32 %v167_v23, %v57_v16 }
  0xf7   :  { %188 = vst [vmem:[#allocation8 + $0x18] sm:$0xff] %v173_v24 }
  0xf8   :  { %291 = shalt.err (!%p288_p0)
}
  0xf9   :  { %s314_s2 = smov 256   ;;  %s315_s29 = smov 16  }
  0xfa   :  { %200 = dma.vmem_to_hbm [thread:$0]  %s195_s27, 512, %s351_s3, [#allocation5], %s314_s2, %s314_s2, %s315_s29  }
  0xfb   :  { %304 = dma.done.wait [#allocation5], 512  }
  0xfc   :  { %305 = vsyncadd [#allocation5], 4294966784 }
  0xfd   :  { %204 = vsyncpa [#allocation4], 1 }
  0xfe   :  { %205 = vsyncpa [#allocation7], 1 }
  0xff   :  { %206 = vsyncpa [#allocation5], 1 }

</bundles_post_ra>
